<compile_context>
chip_gen: v5e
topology: v5e:2x2
jax: 0.10.0
libtpu: 0.0.40
codegen_flags: <defaults>
</compile_context>

<pallas_src>
import math
import functools

import jax
import jax.numpy as jnp
from jax import lax
from jax.experimental import pallas as pl
from jax.experimental.pallas import tpu as pltpu


def _round_up(a, b):
    return (a + b - 1) // b * b


def _make_arc_margin_kernel(s, m, easy_margin, mxu_dtype):
    cos_m = math.cos(m)
    sin_m = math.sin(m)
    th = math.cos(math.pi - m)
    mm = math.sin(math.pi - m) * m

    def kernel(x_ref, w_ref, label_ref, o_ref):
        j = pl.program_id(0)  # class-tile index (leading, megacore-sharded axis)

        x = x_ref[...]
        if x.dtype != mxu_dtype:
            x = x.astype(mxu_dtype)  # feed the MXU natively (bf16 path)

        # Inputs are pre-normalized in the wrapper, so the dot IS the cosine.
        # dot_general contracting (1,1): no transpose of the (TN, in) tile.
        cosine = lax.dot_general(
            x, w_ref[...],
            dimension_numbers=(((1,), (1,)), ((), ())),
            preferred_element_type=jnp.float32)                  # (TM, TN) f32

        TM, TN = o_ref.shape
        col = lax.broadcasted_iota(jnp.int32, (TM, TN), 1) + j * TN
        is_target = col == label_ref[...]                        # (TM, TN)

        # Margin math only on the (TM, 1) target column.
        cos_t = jnp.sum(jnp.where(is_target, cosine, 0.0),
                        axis=-1, keepdims=True)                  # (TM, 1)
        sine = jnp.sqrt(jnp.clip(1.0 - cos_t * cos_t, 0.0, 1.0))
        phi = cos_t * cos_m - sine * sin_m
        if easy_margin:
            phi = jnp.where(cos_t > 0, phi, cos_t)
        else:
            phi = jnp.where(cos_t - th > 0, phi, cos_t - mm)

        # Single vselect blend (phi column broadcasts over lanes) + scale.
        o_ref[...] = (jnp.where(is_target, phi, cosine) * s).astype(o_ref.dtype)

    return kernel


def _pick_tiles(B, in_features, out_features, w_bytes, x_bytes):
    """Choose (TM, TN) against a double-buffered VMEM budget safe on all gens."""
    budget = 24 * 1024 * 1024  # bytes, conservative vs v7x 64 MiB / v5e defaults

    out_pad128 = _round_up(out_features, 128)
    # Small class counts: one lane-dense class tile -> class axis is 1 step.
    if out_pad128 <= 1024 and 2 * out_pad128 * in_features * w_bytes <= budget // 2:
        TN = out_pad128
    else:
        TN = 512
        while TN > 128 and 2 * TN * in_features * w_bytes > budget // 2:
            TN //= 2

    TM = min(512, _round_up(B, 8))

    def footprint(tm, tn):
        return 2 * (tm * in_features * x_bytes +   # x tile
                    tn * in_features * w_bytes +   # weight tile
                    tm * tn * 4 +                  # f32 output tile
                    tm * 4 + 4096)                 # labels + slack

    while TM > 8 and footprint(TM, TN) > budget:
        TM = _round_up(TM // 2, 8)

    return TM, TN, footprint(TM, TN)


@functools.partial(jax.jit,
                   static_argnames=("s", "m", "easy_margin", "bf16_matmul"))
def arc_margin_product(x, weight, label, *, s=32.0, m=0.5, easy_margin=False,
                       bf16_matmul=True):
    """x: [B, in] f32, weight: [out, in] f32, label: [B] int. Returns [B, out] f32."""
    B, in_features = x.shape
    out_features, in_w = weight.shape
    assert in_features == in_w
    eps = 1e-12

    mxu_dtype = jnp.bfloat16 if bf16_matmul else jnp.float32
    w_bytes = 2 if bf16_matmul else 4
    x_bytes = 4  # x stays f32 in HBM; cast to bf16 in-kernel

    TM, TN, fp_bytes = _pick_tiles(B, in_features, out_features, w_bytes, x_bytes)
    B_pad = _round_up(B, TM)
    out_pad = _round_up(out_features, TN)

    # Hoisted normalization (previously recomputed once per grid step).
    xn = x / jnp.maximum(jnp.linalg.norm(x, axis=1, keepdims=True), eps)
    wn = weight / jnp.maximum(jnp.linalg.norm(weight, axis=1, keepdims=True), eps)
    wn = wn.astype(mxu_dtype)  # bf16 weight in HBM: halves the dominant stream

    x_p = xn if B_pad == B else jnp.pad(xn, ((0, B_pad - B), (0, 0)))
    w_p = (wn if out_pad == out_features
           else jnp.pad(wn, ((0, out_pad - out_features), (0, 0))))
    lbl = jnp.full((B_pad, 1), -1, dtype=jnp.int32)
    lbl = lbl.at[:B, 0].set(label.astype(jnp.int32))

    # Class axis leading (megacore split on classes; weight tiles fetched once,
    # x tiles stream on the inner batch axis).
    grid = (out_pad // TN, B_pad // TM)
    kernel = _make_arc_margin_kernel(s, m, easy_margin, mxu_dtype)

    vmem_limit = int(min(48 * 1024 * 1024,
                         max(32 * 1024 * 1024, fp_bytes + (4 << 20))))

    out = pl.pallas_call(
        kernel,
        out_shape=jax.ShapeDtypeStruct((B_pad, out_pad), jnp.float32),
        grid_spec=pltpu.PrefetchScalarGridSpec(
            num_scalar_prefetch=0,
            grid=grid,
            in_specs=[
                pl.BlockSpec((TM, in_features), lambda j, i: (i, 0)),
                pl.BlockSpec((TN, in_features), lambda j, i: (j, 0)),
                pl.BlockSpec((TM, 1), lambda j, i: (i, 0)),
            ],
            out_specs=pl.BlockSpec((TM, TN), lambda j, i: (i, j)),
        ),
        compiler_params=pltpu.CompilerParams(
            dimension_semantics=("parallel", "parallel"),
            vmem_limit_bytes=vmem_limit),
    )(x_p, w_p, lbl)

    return out[:B, :out_features]


def _reference(x, weight, label, *, s=32.0, m=0.5, easy_margin=False):
    eps = 1e-12
    xn = x / jnp.maximum(jnp.linalg.norm(x, axis=1, keepdims=True), eps)
    wn = weight / jnp.maximum(jnp.linalg.norm(weight, axis=1, keepdims=True), eps)
    cosine = xn @ wn.T
    sine = jnp.sqrt(1.0 - cosine ** 2)
    phi = cosine * math.cos(m) - sine * math.sin(m)
    if easy_margin:
        phi = jnp.where(cosine > 0, phi, cosine)
    else:
        th = math.cos(math.pi - m)
        mm = math.sin(math.pi - m) * m
        phi = jnp.where(cosine - th > 0, phi, cosine - mm)
    one_hot = jax.nn.one_hot(label, cosine.shape[1], dtype=jnp.float32)
    return (one_hot * phi + (1.0 - one_hot) * cosine) * s


if __name__ == "__main__":
    # Module defaults: in_features=128, out_features=200.
    B, in_features, out_features = 8, 128, 200
    s, m, easy_margin = 32.0, 0.5, False

    key = jax.random.PRNGKey(0)
    kx, kw, kl = jax.random.split(key, 3)

    x = jax.random.normal(kx, (B, in_features), dtype=jnp.float32)

    # Deterministic xavier_uniform_-style init for weight [out, in].
    bound = math.sqrt(6.0 / (in_features + out_features))
    weight = jax.random.uniform(
        kw, (out_features, in_features), dtype=jnp.float32,
        minval=-bound, maxval=bound)

    label = jax.random.randint(kl, (B,), 0, out_features, dtype=jnp.int32)

    ref = _reference(x, weight, label, s=s, m=m, easy_margin=easy_margin)

    # f32 MXU path: bit-close check against the reference.
    out_f32 = arc_margin_product(x, weight, label, s=s, m=m,
                                 easy_margin=easy_margin, bf16_matmul=False)
    out_f32 = jax.block_until_ready(out_f32)
    assert out_f32.shape == (B, out_features)
    assert jnp.allclose(out_f32, ref, atol=2e-3, rtol=2e-3), "f32 path mismatch"

    # bf16 MXU path (default / fast path): looser tolerance from bf16 operands.
    out_bf16 = arc_margin_product(x, weight, label, s=s, m=m,
                                  easy_margin=easy_margin, bf16_matmul=True)
    out_bf16 = jax.block_until_ready(out_bf16)
    assert out_bf16.shape == (B, out_features)
    assert jnp.allclose(out_bf16, ref, atol=5e-2, rtol=1e-3), "bf16 path mismatch"

    print("KERNEL_OK")
</pallas_src>

<mosaic_0001>
module attributes {stable_mosaic.version = 11 : i64} {
  func.func @kernel(%arg0: i32, %arg1: i32, %arg2: memref<8x128xf32, #tpu.memory_space<vmem>>, %arg3: memref<256x128xf32, #tpu.memory_space<vmem>>, %arg4: memref<8x1xi32, #tpu.memory_space<vmem>>, %arg5: memref<8x256xf32, #tpu.memory_space<vmem>>) attributes {dimension_semantics = [#tpu.dimension_semantics<parallel>, #tpu.dimension_semantics<parallel>], iteration_bounds = array<i64: 1, 1>, scalar_prefetch = 0 : i64, scratch_operands = 0 : i64, tpu.core_type = #tpu.core_type<tc>, window_params = [{transform_indices = @transform_0, window_bounds = array<i64: 8, 128>}, {transform_indices = @transform_1, window_bounds = array<i64: 256, 128>}, {transform_indices = @transform_2, window_bounds = array<i64: 8, 1>}, {transform_indices = @transform_3, window_bounds = array<i64: 8, 256>}]} {
    %c0 = arith.constant 0 : index
    %c0_0 = arith.constant 0 : index
    %0 = vector.load %arg2[%c0, %c0_0] : memref<8x128xf32, #tpu.memory_space<vmem>>, vector<8x128xf32>
    %c0_1 = arith.constant 0 : index
    %c0_2 = arith.constant 0 : index
    %1 = vector.load %arg3[%c0_1, %c0_2] : memref<256x128xf32, #tpu.memory_space<vmem>>, vector<256x128xf32>
    %cst = arith.constant dense<0.000000e+00> : vector<8x256xf32>
    %2 = tpu.matmul %0, %1, %cst {dimension_numbers = #tpu.dot_dimension_numbers<[1], [1], [0], [0], [0, 0, 1, 0], [], []>} : vector<8x128xf32>, vector<256x128xf32>, vector<8x256xf32> -> vector<8x256xf32>
    %3 = tpu.iota {dimensions = array<i32: 1>} : vector<8x256xi32>
    %c256_i32 = arith.constant 256 : i32
    %4 = arith.muli %arg0, %c256_i32 : i32
    %5 = vector.broadcast %4 : i32 to vector<8x256xi32>
    %6 = arith.addi %3, %5 : vector<8x256xi32>
    %c0_3 = arith.constant 0 : index
    %c0_4 = arith.constant 0 : index
    %7 = vector.load %arg4[%c0_3, %c0_4] : memref<8x1xi32, #tpu.memory_space<vmem>>, vector<8x1xi32>
    %8 = vector.broadcast %7 : vector<8x1xi32> to vector<8x256xi32>
    %9 = arith.cmpi eq, %6, %8 : vector<8x256xi32>
    %cst_5 = arith.constant 0.000000e+00 : f32
    %10 = vector.broadcast %cst_5 : f32 to vector<8x256xf32>
    %11 = arith.select %9, %2, %10 : vector<8x256xi1>, vector<8x256xf32>
    %cst_6 = arith.constant dense<0.000000e+00> : vector<8xf32>
    %12 = vector.multi_reduction <add>, %11, %cst_6 [1] : vector<8x256xf32> to vector<8xf32>
    %13 = vector.shape_cast %12 : vector<8xf32> to vector<8x1xf32>
    %14 = arith.mulf %13, %13 : vector<8x1xf32>
    %cst_7 = arith.constant 1.000000e+00 : f32
    %15 = vector.broadcast %cst_7 : f32 to vector<8x1xf32>
    %16 = arith.subf %15, %14 : vector<8x1xf32>
    %cst_8 = arith.constant 0.000000e+00 : f32
    %cst_9 = arith.constant 1.000000e+00 : f32
    %17 = vector.broadcast %cst_8 : f32 to vector<8x1xf32>
    %18 = arith.maximumf %17, %16 : vector<8x1xf32>
    %19 = vector.broadcast %cst_9 : f32 to vector<8x1xf32>
    %20 = arith.minimumf %19, %18 : vector<8x1xf32>
    %21 = math.sqrt %20 : vector<8x1xf32>
    %cst_10 = arith.constant 0.87758255 : f32
    %22 = vector.broadcast %cst_10 : f32 to vector<8x1xf32>
    %23 = arith.mulf %13, %22 : vector<8x1xf32>
    %cst_11 = arith.constant 0.47942555 : f32
    %24 = vector.broadcast %cst_11 : f32 to vector<8x1xf32>
    %25 = arith.mulf %21, %24 : vector<8x1xf32>
    %26 = arith.subf %23, %25 : vector<8x1xf32>
    %cst_12 = arith.constant -0.87758255 : f32
    %27 = vector.broadcast %cst_12 : f32 to vector<8x1xf32>
    %28 = arith.subf %13, %27 : vector<8x1xf32>
    %cst_13 = arith.constant 0.000000e+00 : f32
    %29 = vector.broadcast %cst_13 : f32 to vector<8x1xf32>
    %30 = arith.cmpf ogt, %28, %29 : vector<8x1xf32>
    %cst_14 = arith.constant 0.239712775 : f32
    %31 = vector.broadcast %cst_14 : f32 to vector<8x1xf32>
    %32 = arith.subf %13, %31 : vector<8x1xf32>
    %33 = arith.select %30, %26, %32 : vector<8x1xi1>, vector<8x1xf32>
    %34 = vector.shape_cast %33 : vector<8x1xf32> to vector<8x1xf32>
    %35 = vector.broadcast %34 : vector<8x1xf32> to vector<8x256xf32>
    %36 = arith.select %9, %35, %2 : vector<8x256xi1>, vector<8x256xf32>
    %cst_15 = arith.constant 3.200000e+01 : f32
    %37 = vector.broadcast %cst_15 : f32 to vector<8x256xf32>
    %38 = arith.mulf %36, %37 : vector<8x256xf32>
    %c0_16 = arith.constant 0 : index
    %c0_17 = arith.constant 0 : index
    %39 = vector.load %arg5[%c0_16, %c0_17] : memref<8x256xf32, #tpu.memory_space<vmem>>, vector<8x256xf32>
    tpu.vector_store %arg5[%c0_16, %c0_17], %38 {strides = array<i32>} : memref<8x256xf32, #tpu.memory_space<vmem>>, vector<8x256xf32>,
    return
  }
  func.func @transform_0(%arg0: i32, %arg1: i32) -> (i32, i32) {
    %c0_i32 = arith.constant 0 : i32
    %c0_i32_0 = arith.constant 0 : i32
    return %arg1, %c0_i32 : i32, i32
  }
  func.func @transform_1(%arg0: i32, %arg1: i32) -> (i32, i32) {
    %c0_i32 = arith.constant 0 : i32
    %c0_i32_0 = arith.constant 0 : i32
    return %arg0, %c0_i32 : i32, i32
  }
  func.func @transform_2(%arg0: i32, %arg1: i32) -> (i32, i32) {
    %c0_i32 = arith.constant 0 : i32
    %c0_i32_0 = arith.constant 0 : i32
    return %arg1, %c0_i32 : i32, i32
  }
  func.func @transform_3(%arg0: i32, %arg1: i32) -> (i32, i32) {
    %c0_i32 = arith.constant 0 : i32
    return %arg1, %arg0 : i32, i32
  }
}

</mosaic_0001>

<bundles_post_ra>
// kernel: arc_margin_product.1
= control target key start
LH: loop header
LB: loop body
LE: loop exit
PB: predicated region body
PF: predicated region fallthrough
CT: control target
= control target key end

     0   :  { %s315_s0 = inlined_call_operand.vmem [shape: f32[8,128], index: 0, kind: input, shape index: {}]   ;;  %s316_s1 = inlined_call_operand.vmem [shape: f32[256,128], index: 1, kind: input, shape index: {}]   ;;  %s317_s2 = inlined_call_operand.vmem [shape: s32[8,1], index: 2, kind: input, shape index: {}]   ;;  %s318_s3 = inlined_call_operand.hbm [shape: f32[8,256], index: 3, kind: output, shape index: {}]  }
   0x1   :  { %v31_v0 = vld [vmem:[%s316_s1 + $0x78] sm:$0xff]  ;;  %v30_v2 = vld [vmem:[%s316_s1 + $0x70] sm:$0xff]  ;;  %v29_v4 = vld [vmem:[%s316_s1 + $0x68] sm:$0xff] }
   0x2   :  { %v47_v1 = vld [vmem:[%s316_s1 + $0xf8] sm:$0xff]  ;;  %48 = vmatpush.xpose.msra.mxu0 %v31_v0  ;;  %v46_v3 = vld [vmem:[%s316_s1 + $0xf0] sm:$0xff]  ;;  %v45_v5 = vld [vmem:[%s316_s1 + $0xe8] sm:$0xff] }
   0x3   :  { %68 = vmatpush.xpose.msra.mxu1 %v47_v1 }
   0x6   :  { %49 = vmatpush.xpose.msra.mxu0 %v30_v2 }
   0x7   :  { %69 = vmatpush.xpose.msra.mxu1 %v46_v3 }
   0x8   :  { %8 = vsyncpa [#allocation3], 0  ;;  %v28_v6 = vld [vmem:[%s316_s1 + $0x60] sm:$0xff]  ;;  %v27_v8 = vld [vmem:[%s316_s1 + $0x58] sm:$0xff]  ;;  %v184_v21 = vmov 0   ;;  %v88_v35 = vlaneseq  ;;  %s142_s27 = sshll.u32 %s318_s3, 4  ;;  %s143_s27 = int_to_ptr.hbm [resolvable:$true] %s142_s27 }
   0x9   :  { %v44_v7 = vld [vmem:[%s316_s1 + $0xe0] sm:$0xff]  ;;  %v43_v9 = vld [vmem:[%s316_s1 + $0xd8] sm:$0xff]  ;;  %v26_v10 = vld [vmem:[%s316_s1 + $0x50] sm:$0xff]  ;;  %155 = vset.pattern.permute.xlu0 %v184_v21 }
   0xa   :  { %50 = vmatpush.xpose.msra.mxu0 %v29_v4  ;;  %v42_v11 = vld [vmem:[%s316_s1 + $0xd0] sm:$0xff]  ;;  %v25_v12 = vld [vmem:[%s316_s1 + $0x48] sm:$0xff]  ;;  %v24_v14 = vld [vmem:[%s316_s1 + $0x40] sm:$0xff]  ;;  %v89_v36 = vand.u32 127, %v88_v35 }
   0xb   :  { %70 = vmatpush.xpose.msra.mxu1 %v45_v5  ;;  %v41_v13 = vld [vmem:[%s316_s1 + $0xc8] sm:$0xff]  ;;  %v40_v15 = vld [vmem:[%s316_s1 + $0xc0] sm:$0xff]  ;;  %v23_v16 = vld [vmem:[%s316_s1 + $0x38] sm:$0xff] }
   0xc   :  { %v39_v17 = vld [vmem:[%s316_s1 + $0xb8] sm:$0xff]  ;;  %v95_v18 = vld [vmem:[%s317_s2] sm:$0xff]  ;;  %v22_v19 = vld [vmem:[%s316_s1 + $0x30] sm:$0xff]  ;;  %v90_v37 = vadd.s32 128, %v89_v36 }
   0xd   :  { %v38_v20 = vld [vmem:[%s316_s1 + $0xb0] sm:$0xff]  ;;  %97 = vperm.xlu0 %155, %v95_v18   ;;  %v21_v22 = vld [vmem:[%s316_s1 + $0x28] sm:$0xff]  ;;  %v20_v24 = vld [vmem:[%s316_s1 + $0x20] sm:$0xff] }
   0xe   :  { %51 = vmatpush.xpose.msra.mxu0 %v28_v6  ;;  %v37_v23 = vld [vmem:[%s316_s1 + $0xa8] sm:$0xff]  ;;  %v36_v25 = vld [vmem:[%s316_s1 + $0xa0] sm:$0xff]  ;;  %v19_v26 = vld [vmem:[%s316_s1 + $0x18] sm:$0xff] }
   0xf   :  { %71 = vmatpush.xpose.msra.mxu1 %v44_v7  ;;  %v35_v27 = vld [vmem:[%s316_s1 + $0x98] sm:$0xff]  ;;  %v18_v28 = vld [vmem:[%s316_s1 + $0x10] sm:$0xff]  ;;  %v17_v30 = vld [vmem:[%s316_s1 + $0x8] sm:$0xff] }
  0x10   :  { %v34_v29 = vld [vmem:[%s316_s1 + $0x90] sm:$0xff]  ;;  %v33_v31 = vld [vmem:[%s316_s1 + $0x88] sm:$0xff]  ;;  %v16_v32 = vld [vmem:[%s316_s1] sm:$0xff] }
  0x11   :  { %v32_v33 = vld [vmem:[%s316_s1 + $0x80] sm:$0xff] }
  0x12   :  { %52 = vmatpush.xpose.msra.mxu0 %v27_v8  ;;  %v15_v34 = vld [vmem:[%s315_s0] sm:$0xff]  ;;  %s185_s0 = smov [#allocation2]  }
  0x13   :  { %72 = vmatpush.xpose.msra.mxu1 %v43_v9  ;;  %s140_s1 = sshll.u32 %s185_s0, 4  ;;  %s141_s1 = int_to_ptr.vmem [resolvable:$true] %s140_s1 }
  0x16   :  { %53 = vmatpush.xpose.msra.mxu0 %v26_v10 }
  0x17   :  { %73 = vmatpush.xpose.msra.mxu1 %v42_v11 }
  0x1a   :  { %54 = vmatpush.xpose.msra.mxu0 %v25_v12 }
  0x1b   :  { %74 = vmatpush.xpose.msra.mxu1 %v41_v13 }
  0x1e   :  { %55 = vmatpush.xpose.msra.mxu0 %v24_v14 }
  0x1f   :  { %75 = vmatpush.xpose.msra.mxu1 %v40_v15 }
  0x22   :  { %56 = vmatpush.xpose.msra.mxu0 %v23_v16 }
  0x23   :  { %76 = vmatpush.xpose.msra.mxu1 %v39_v17 }
  0x26   :  { %57 = vmatpush.xpose.msra.mxu0 %v22_v19 }
  0x27   :  { %77 = vmatpush.xpose.msra.mxu1 %v38_v20 }
  0x2a   :  { %58 = vmatpush.xpose.msra.mxu0 %v21_v22 }
  0x2b   :  { %78 = vmatpush.xpose.msra.mxu1 %v37_v23 }
  0x2e   :  { %59 = vmatpush.xpose.msra.mxu0 %v20_v24 }
  0x2f   :  { %79 = vmatpush.xpose.msra.mxu1 %v36_v25 }
  0x32   :  { %60 = vmatpush.xpose.msra.mxu0 %v19_v26 }
  0x33   :  { %80 = vmatpush.xpose.msra.mxu1 %v35_v27 }
  0x36   :  { %61 = vmatpush.xpose.msra.mxu0 %v18_v28 }
  0x37   :  { %81 = vmatpush.xpose.msra.mxu1 %v34_v29 }
  0x3a   :  { %62 = vmatpush.xpose.msra.mxu0 %v17_v30 }
  0x3b   :  { %82 = vmatpush.xpose.msra.mxu1 %v33_v31 }
  0x3e   :  { %63 = vmatpush.xpose.msra.mxu0 %v16_v32 }
  0x3f   :  { %83 = vmatpush.xpose.msra.mxu1 %v32_v33 }
  0x41   :  { %64 = vmatmul.f32.vlgmr.msra.gmra.mxu0 %v15_v34 }
  0x42   :  { %84 = vmatmul.f32.vlgmr.msra.gmra.mxu1 %v15_v34 }
  0x7f   :  { %v98_v38 = vpop.permute.xlu0 %97 }
  0x80   :  { %vm99_vm0 = vcmp.eq.s32.totalorder %v89_v36, %v98_v38  ;;  %vm100_vm1 = vcmp.eq.s32.totalorder %v90_v37, %v98_v38 }
  0xbe   :  { %v65_v39 = vpop.f32.mrf.mxu0 }
  0xbf   :  { %v85_v40 = vpop.f32.mrf.mxu1  ;;  %v101_v41 = vsel %vm99_vm0, %v65_v39, 0.0 }
  0xc0   :  { %v102_v42 = vsel %vm100_vm1, %v85_v40, 0.0 }
  0xc1   :  { %v103_v43 = vadd.f32 %v102_v42, %v101_v41 }
  0xc3   :  { %104 = vadd.xlane.f32.xlu0 %v103_v43 }
 0x136   :  { %v105_v44 = vpop.xlane.xlu0 %104 }
 0x137   :  { %v106_v45 = vmul.f32 %v105_v44, %v105_v44  ;;  %v151_v59 = vadd.f32 0.87758255, %v105_v44  ;;  %v122_v60 = vmul.f32 0.87758255, %v105_v44  ;;  %v152_v63 = vadd.f32 -0.23971277, %v105_v44 }
 0x139   :  { %v107_v46 = vsub.f32 1.0, %v106_v45  ;;  %vm126_vm4 = vcmp.gt.f32.partialorder %v151_v59, 0.0 }
 0x13b   :  { %v108_v47 = vmax.f32 %v107_v46, 0.0 }
 0x13d   :  { %v109_v48 = vmin.f32 %v108_v47, 1.0 }
 0x13f   :  { %156 = vrsqrt.f32 %v109_v48  ;;  %vm117_vm2 = vcmp.eq.f32.partialorder %v109_v48, inf  ;;  %v120_v56 = vand.u32 2147483648, %v109_v48  ;;  %vm119_vm3 = vcmp.eq.f32.partialorder %v109_v48, 0.0 }
 0x145   :  { %v157_v49 = vpop.eup %156 }
 0x146   :  { %v111_v50 = vmul.f32 %v157_v49, %v109_v48 }
 0x148   :  { %v112_v51 = vmul.f32 %v157_v49, %v111_v50 }
 0x14a   :  { %v113_v52 = vmul.f32 0.5, %v112_v51 }
 0x14c   :  { %v114_v53 = vsub.f32 1.5, %v113_v52 }
 0x14e   :  { %v115_v54 = vmul.f32 %v157_v49, %v114_v53 }
 0x150   :  { %v116_v55 = vmul.f32 %v115_v54, %v109_v48 }
 0x152   :  { %v118_v57 = vsel %vm117_vm2, %v109_v48, %v116_v55 }
 0x153   :  { %v121_v58 = vsel %vm119_vm3, %v120_v56, %v118_v57 }
 0x154   :  { %v123_v61 = vmul.f32 0.47942555, %v121_v58 }
 0x156   :  { %v124_v62 = vsub.f32 %v122_v60, %v123_v61 }
 0x158   :  { %v128_v0 = vsel %vm126_vm4, %v124_v62, %v152_v63 }
 0x159   :  { %v129_v1 = vsel %vm99_vm0, %v128_v0, %v65_v39  ;;  %v130_v2 = vsel %vm100_vm1, %v128_v0, %v85_v40 }
 0x15a   :  { %v131_v3 = vmul.f32 32.0, %v129_v1  ;;  %v132_v4 = vmul.f32 32.0, %v130_v2 }
 0x15c   :  { %133 = vst [vmem:[#allocation2] sm:$0xff] %v131_v3 }
 0x15d   :  { %134 = vst [vmem:[#allocation2 + $0x8] sm:$0xff] %v132_v4 }
 0x15e   :  { %145 = dma.vmem_to_hbm [thread:$0]  %s141_s1, 256, %s143_s27, [#allocation3]  }
 0x15f   :  { %182 = dma.done.wait [#allocation3], 256  }
 0x160   :  { %183 = vsyncadd [#allocation3], 4294967040 }
 0x161   :  { %150 = vsyncpa [#allocation3], 1 }

</bundles_post_ra>
